<compile_context>
chip_gen: v7x
topology: tpu7x:2x2x1
jax: 0.10.0
libtpu: 0.0.40
codegen_flags: <defaults>
</compile_context>

<pallas_src>
import functools

import jax
import jax.numpy as jnp
from jax import lax
from jax.experimental import pallas as pl
from jax.experimental.pallas import tpu as pltpu


def _round_up(v: int, m: int) -> int:
    return ((v + m - 1) // m) * m


def _pad_to(a, shape):
    pads = [(0, t - s) for s, t in zip(a.shape, shape)]
    if all(p == (0, 0) for p in pads):
        return a
    return jnp.pad(a, pads)


def _tpu_vmem_and_multicore():
    """Return (vmem_limit_bytes, multi_tensorcore) with safe fallbacks."""
    phys = None
    cores = None
    try:
        info = pltpu.get_tpu_info()
        for name in ("vmem_capacity_bytes", "vmem_size_bytes", "vmem_bytes"):
            v = getattr(info, name, None)
            if isinstance(v, int) and v > 0:
                phys = v
                break
        for name in ("num_cores", "core_count", "num_tensorcores"):
            v = getattr(info, name, None)
            if isinstance(v, int) and v > 0:
                cores = v
                break
    except Exception:  # best-effort hardware query only
        pass
    if phys is None:
        phys = 64 * 1024 * 1024          # conservative: assume v7x-sized VMEM
    if cores is None:
        cores = 2 if phys <= 64 * 1024 * 1024 else 1
    if phys <= 64 * 1024 * 1024:         # v7x: 64 MiB physical per TC
        limit = 48 * 1024 * 1024
    else:                                # v5e / v6e: 128 MiB physical
        limit = 100 * 1024 * 1024
    return limit, cores > 1


def _choose_tiling(B, n_pad, din_pad, dout_pad, out_itemsize, project_first,
                   block_budget, multi_tc):
    """Pick the node tile and whether the feature slab stays VMEM-resident."""
    dfeat = dout_pad if project_first else din_pad

    def agg_vmem(t, feat_resident):
        vb = 2 * t * t * 2                                      # adj (bf16, x2 buf)
        vb += 2 * (n_pad if feat_resident else t) * dfeat * 2   # features
        if not project_first:
            vb += 2 * din_pad * dout_pad * 2                    # fused weight
        vb += 2 * 8 * dout_pad * 4                              # bias (row-padded)
        vb += t * dfeat * 4                                     # f32 accumulator
        vb += 2 * t * dout_pad * out_itemsize                   # output block
        return vb

    t = 128
    for cand in (1024, 512, 256, 128):
        if n_pad % cand == 0 and agg_vmem(cand, False) <= block_budget:
            t = cand
            break
    # v7x has two TensorCores: keep >= 2 iterations on the parallel axes.
    while multi_tc and B * (n_pad // t) < 2 and t > 128:
        t //= 2
    feat_resident = agg_vmem(t, True) <= block_budget
    return t, feat_resident, dfeat


# --------------------------------------------------------------------------
# Kernel 1: shared feature projection  xw = x @ W   (used when project-first)
# --------------------------------------------------------------------------
def _project_kernel(x_ref, w_ref, o_ref):
    o_ref[...] = jnp.dot(
        x_ref[...], w_ref[...], preferred_element_type=jnp.float32
    ).astype(o_ref.dtype)


def _project(x_p, w_p, t, vmem_limit):
    B, n_pad, din_pad = x_p.shape
    dout_pad = w_p.shape[1]
    return pl.pallas_call(
        _project_kernel,
        out_shape=jax.ShapeDtypeStruct((B, n_pad, dout_pad), jnp.bfloat16),
        grid_spec=pltpu.PrefetchScalarGridSpec(
            num_scalar_prefetch=0,
            grid=(B, n_pad // t),
            in_specs=[
                pl.BlockSpec((None, t, din_pad), lambda b, m: (b, m, 0)),
                pl.BlockSpec((din_pad, dout_pad), lambda b, m: (0, 0)),
            ],
            out_specs=pl.BlockSpec((None, t, dout_pad), lambda b, m: (b, m, 0)),
        ),
        compiler_params=pltpu.CompilerParams(
            dimension_semantics=("parallel", "parallel"),
            vmem_limit_bytes=vmem_limit,
        ),
        cost_estimate=pl.CostEstimate(
            flops=2 * B * n_pad * din_pad * dout_pad,
            transcendentals=0,
            bytes_accessed=int(x_p.size * 2 + w_p.size * 2
                               + B * n_pad * dout_pad * 2),
        ),
    )(x_p, w_p)


# --------------------------------------------------------------------------
# Kernel 2: neighbor aggregation (tiled over nodes) + fused epilogue
# --------------------------------------------------------------------------
def _graphconv_agg_kernel(*refs, add_self, normalize_embedding, use_bias,
                          project_at_end, feat_resident, node_tile):
    it = iter(refs)
    adj_ref = next(it)
    feat_ref = next(it)
    w_ref = next(it) if project_at_end else None
    b_ref = next(it) if use_bias else None
    o_ref = next(it)
    acc_ref = next(it)

    k = pl.program_id(2)

    @pl.when(k == 0)
    def _init():
        acc_ref[...] = jnp.zeros_like(acc_ref)

    if feat_resident:
        row = pl.multiple_of(k * node_tile, node_tile)
        feat_blk = feat_ref[pl.ds(row, node_tile), :]
    else:
        feat_blk = feat_ref[...]

    # MXU: bf16 operands, f32 accumulation in VMEM scratch.
    acc_ref[...] += jnp.dot(adj_ref[...], feat_blk,
                            preferred_element_type=jnp.float32)

    if add_self:
        # Self term == diagonal block of the implicit (adj + I): only k == m.
        @pl.when(k == pl.program_id(1))
        def _self():
            acc_ref[...] += feat_blk.astype(jnp.float32)

    @pl.when(k == pl.num_programs(2) - 1)
    def _finalize():
        y = acc_ref[...]
        if project_at_end:
            y = jnp.dot(y.astype(jnp.bfloat16), w_ref[...],
                        preferred_element_type=jnp.float32)
        if use_bias:
            y = y + b_ref[...]
        if normalize_embedding:
            # F.normalize(p=2, dim=2): y / max(||y||, 1e-12).  Padded columns
            # are zero (weight / bias zero-padded) so the norm is exact.
            ssq = jnp.sum(y * y, axis=-1, keepdims=True)
            y = y * lax.rsqrt(jnp.maximum(ssq, 1e-24))
        o_ref[...] = y.astype(o_ref.dtype)


def graph_conv(x, adj, weight, bias=None, *,
               add_self: bool = False, normalize_embedding: bool = False):
    """Pallas implementation of GraphConv.forward (dropout == 0 path)."""
    B, N, Din = x.shape
    Din_w, Dout = weight.shape
    assert Din_w == Din

    n_pad = _round_up(N, 128)
    din_pad = _round_up(Din, 128)
    dout_pad = _round_up(Dout, 128)

    bf16 = jnp.bfloat16
    out_dtype = x.dtype
    out_itemsize = jnp.dtype(out_dtype).itemsize

    vmem_limit, multi_tc = _tpu_vmem_and_multicore()
    block_budget = int(vmem_limit * 0.9)   # headroom for compiler internals

    # Cheaper association: contract the N x N aggregation against the narrower
    # feature width.  Also forced when the fused epilogue weight block would
    # eat too much of the VMEM budget (v7x safety).
    weight_block_bytes = 2 * din_pad * dout_pad * 2   # double-buffered bf16
    project_first = (dout_pad < din_pad) or (weight_block_bytes > block_budget // 3)

    t, feat_resident, dfeat = _choose_tiling(
        B, n_pad, din_pad, dout_pad, out_itemsize, project_first,
        block_budget, multi_tc)

    # Cast to bf16 BEFORE zero-padding (halves the pad/cast prologue HBM
    # traffic on the dominant adj tensor).
    x_p = _pad_to(x.astype(bf16), (B, n_pad, din_pad))
    adj_p = _pad_to(adj.astype(bf16), (B, n_pad, n_pad))
    w_p = _pad_to(weight.astype(bf16), (din_pad, dout_pad))

    use_bias = bias is not None

    if project_first:
        feat = _project(x_p, w_p, t, vmem_limit)   # (B, n_pad, dout_pad) bf16
    else:
        feat = x_p                                 # (B, n_pad, din_pad) bf16

    kernel = functools.partial(
        _graphconv_agg_kernel,
        add_self=add_self,
        normalize_embedding=normalize_embedding,
        use_bias=use_bias,
        project_at_end=not project_first,
        feat_resident=feat_resident,
        node_tile=t,
    )

    in_specs = [pl.BlockSpec((None, t, t), lambda b, m, k: (b, m, k))]   # adj
    inputs = [adj_p]
    if feat_resident:
        in_specs.append(
            pl.BlockSpec((None, n_pad, dfeat), lambda b, m, k: (b, 0, 0)))
    else:
        in_specs.append(
            pl.BlockSpec((None, t, dfeat), lambda b, m, k: (b, k, 0)))
    inputs.append(feat)
    if not project_first:
        in_specs.append(pl.BlockSpec((din_pad, dout_pad), lambda b, m, k: (0, 0)))
        inputs.append(w_p)
    if use_bias:
        b_p = _pad_to(bias.reshape(1, Dout).astype(jnp.float32), (1, dout_pad))
        in_specs.append(pl.BlockSpec((1, dout_pad), lambda b, m, k: (0, 0)))
        inputs.append(b_p)

    m_tiles = n_pad // t
    flops = 2 * B * n_pad * n_pad * dfeat
    if not project_first:
        flops += 2 * B * n_pad * din_pad * dout_pad
    feat_reads = 1 if feat_resident else m_tiles   # per-batch re-fetch factor
    bytes_accessed = int(
        B * n_pad * n_pad * 2                      # adj stream (bf16)
        + feat_reads * B * n_pad * dfeat * 2       # feature reads
        + (0 if project_first else din_pad * dout_pad * 2)
        + (dout_pad * 4 if use_bias else 0)
        + B * n_pad * dout_pad * out_itemsize      # output writeback
    )

    out = pl.pallas_call(
        kernel,
        out_shape=jax.ShapeDtypeStruct((B, n_pad, dout_pad), out_dtype),
        grid_spec=pltpu.PrefetchScalarGridSpec(
            num_scalar_prefetch=0,
            grid=(B, m_tiles, m_tiles),
            in_specs=in_specs,
            out_specs=pl.BlockSpec((None, t, dout_pad), lambda b, m, k: (b, m, 0)),
            scratch_shapes=[pltpu.VMEM((t, dfeat), jnp.float32)],
        ),
        compiler_params=pltpu.CompilerParams(
            dimension_semantics=("parallel", "parallel", "arbitrary"),
            vmem_limit_bytes=vmem_limit,
        ),
        cost_estimate=pl.CostEstimate(
            flops=flops,
            transcendentals=(B * n_pad if normalize_embedding else 0),
            bytes_accessed=bytes_accessed,
        ),
    )(*inputs)

    return out[:, :N, :Dout]


if __name__ == "__main__":
    key = jax.random.PRNGKey(0)
    k1, k2, k3, k4, k5, k6, k7 = jax.random.split(key, 7)

    # --- Case 1: plain GraphConv (bias, no self-loop, no normalization) -----
    B, N, Din, Dout = 2, 8, 16, 32
    x = jax.random.normal(k1, (B, N, Din), dtype=jnp.float32)
    adj = jax.random.uniform(k2, (B, N, N), dtype=jnp.float32)
    weight = jax.random.normal(k3, (Din, Dout), dtype=jnp.float32) * 0.1
    bias = jax.random.normal(k4, (Dout,), dtype=jnp.float32) * 0.1

    out = graph_conv(x, adj, weight, bias,
                     add_self=False, normalize_embedding=False)
    out = jax.block_until_ready(out)

    ref = jnp.matmul(jnp.matmul(adj, x), weight) + bias
    assert out.shape == (B, N, Dout)
    assert jnp.allclose(out, ref, atol=7e-2, rtol=7e-2), (
        f"max abs err {jnp.max(jnp.abs(out - ref))}")

    # --- Case 2: add_self + normalize, no bias, Dout < Din (project-first) --
    B2, N2, Din2, Dout2 = 2, 8, 192, 32
    x2 = jax.random.normal(k5, (B2, N2, Din2), dtype=jnp.float32)
    adj2 = jax.random.uniform(k6, (B2, N2, N2), dtype=jnp.float32)
    w2 = jax.random.normal(k7, (Din2, Dout2), dtype=jnp.float32) * 0.1

    out2 = graph_conv(x2, adj2, w2, None,
                      add_self=True, normalize_embedding=True)
    out2 = jax.block_until_ready(out2)

    y2 = jnp.matmul(adj2, x2) + x2
    y2 = jnp.matmul(y2, w2)
    nrm = jnp.maximum(jnp.linalg.norm(y2, axis=2, keepdims=True), 1e-12)
    ref2 = y2 / nrm
    assert out2.shape == (B2, N2, Dout2)
    assert jnp.allclose(out2, ref2, atol=7e-2, rtol=7e-2), (
        f"max abs err {jnp.max(jnp.abs(out2 - ref2))}")

    print("KERNEL_OK")
</pallas_src>

<mosaic_0001>
module attributes {stable_mosaic.version = 11 : i64} {
  func.func @_graphconv_agg_kernel(%arg0: i32, %arg1: i32, %arg2: i32, %arg3: memref<1x128x128xbf16, #tpu.memory_space<vmem>>, %arg4: memref<1x128x128xbf16, #tpu.memory_space<vmem>>, %arg5: memref<128x128xbf16, #tpu.memory_space<vmem>>, %arg6: memref<1x128xf32, #tpu.memory_space<vmem>>, %arg7: memref<1x128x128xf32, #tpu.memory_space<vmem>>, %arg8: memref<128x128xf32, #tpu.memory_space<vmem>>) attributes {dimension_semantics = [#tpu.dimension_semantics<parallel>, #tpu.dimension_semantics<parallel>, #tpu.dimension_semantics<arbitrary>], iteration_bounds = array<i64: 2, 1, 1>, scalar_prefetch = 0 : i64, scratch_operands = 1 : i64, tpu.core_type = #tpu.core_type<tc>, window_params = [{transform_indices = @transform_0, window_bounds = array<i64: 1, 128, 128>}, {transform_indices = @transform_1, window_bounds = array<i64: 1, 128, 128>}, {pipeline_mode = #tpu.pipeline_mode<synchronous>, transform_indices = @transform_2, window_bounds = array<i64: 128, 128>}, {pipeline_mode = #tpu.pipeline_mode<synchronous>, transform_indices = @transform_3, window_bounds = array<i64: 1, 128>}, {transform_indices = @transform_4, window_bounds = array<i64: 1, 128, 128>}]} {
    %c0_i32 = arith.constant 0 : i32
    %0 = arith.cmpi eq, %arg2, %c0_i32 : i32
    %1 = arith.extui %0 : i1 to i32
    %c0_i32_0 = arith.constant 0 : i32
    %2 = arith.cmpi ne, %1, %c0_i32_0 : i32
    scf.if %2 {
      %cst_11 = arith.constant 0.000000e+00 : f32
      %17 = vector.broadcast %cst_11 : f32 to vector<128x128xf32>
      %c0_12 = arith.constant 0 : index
      %c0_13 = arith.constant 0 : index
      %18 = vector.load %arg8[%c0_12, %c0_13] : memref<128x128xf32, #tpu.memory_space<vmem>>, vector<128x128xf32>
      tpu.vector_store %arg8[%c0_12, %c0_13], %17 {strides = array<i32>} : memref<128x128xf32, #tpu.memory_space<vmem>>, vector<128x128xf32>,
    } else {
    }
    %c128_i32 = arith.constant 128 : i32
    %3 = arith.muli %arg2, %c128_i32 : i32
    %4 = tpu.assume_multiple %3, 128 : i32
    %c0 = arith.constant 0 : index
    %5 = arith.index_cast %4 : i32 to index
    %c0_1 = arith.constant 0 : index
    %6 = vector.load %arg4[%c0, %5, %c0_1] : memref<1x128x128xbf16, #tpu.memory_space<vmem>>, vector<1x128x128xbf16>
    %7 = vector.shape_cast %6 : vector<1x128x128xbf16> to vector<128x128xbf16>
    %c0_2 = arith.constant 0 : index
    %c0_3 = arith.constant 0 : index
    %8 = vector.load %arg8[%c0_2, %c0_3] : memref<128x128xf32, #tpu.memory_space<vmem>>, vector<128x128xf32>
    %c0_4 = arith.constant 0 : index
    %c0_5 = arith.constant 0 : index
    %c0_6 = arith.constant 0 : index
    %9 = vector.load %arg3[%c0_4, %c0_5, %c0_6] : memref<1x128x128xbf16, #tpu.memory_space<vmem>>, vector<1x128x128xbf16>
    %10 = vector.shape_cast %9 : vector<1x128x128xbf16> to vector<128x128xbf16>
    %cst = arith.constant dense<0.000000e+00> : vector<128x128xf32>
    %11 = tpu.matmul %10, %7, %cst {dimension_numbers = #tpu.dot_dimension_numbers<[1], [0], [0], [1], [0, 0, 1, 1], [], []>} : vector<128x128xbf16>, vector<128x128xbf16>, vector<128x128xf32> -> vector<128x128xf32>
    %12 = arith.addf %8, %11 : vector<128x128xf32>
    %c0_7 = arith.constant 0 : index
    %c0_8 = arith.constant 0 : index
    %13 = vector.load %arg8[%c0_7, %c0_8] : memref<128x128xf32, #tpu.memory_space<vmem>>, vector<128x128xf32>
    tpu.vector_store %arg8[%c0_7, %c0_8], %12 {strides = array<i32>} : memref<128x128xf32, #tpu.memory_space<vmem>>, vector<128x128xf32>,
    %c0_i32_9 = arith.constant 0 : i32
    %14 = arith.cmpi eq, %arg2, %c0_i32_9 : i32
    %15 = arith.extui %14 : i1 to i32
    %c0_i32_10 = arith.constant 0 : i32
    %16 = arith.cmpi ne, %15, %c0_i32_10 : i32
    scf.if %16 {
      %c0_11 = arith.constant 0 : index
      %c0_12 = arith.constant 0 : index
      %17 = vector.load %arg8[%c0_11, %c0_12] : memref<128x128xf32, #tpu.memory_space<vmem>>, vector<128x128xf32>
      %18 = arith.truncf %17 : vector<128x128xf32> to vector<128x128xbf16>
      %c0_13 = arith.constant 0 : index
      %c0_14 = arith.constant 0 : index
      %19 = vector.load %arg5[%c0_13, %c0_14] : memref<128x128xbf16, #tpu.memory_space<vmem>>, vector<128x128xbf16>
      %cst_15 = arith.constant dense<0.000000e+00> : vector<128x128xf32>
      %20 = tpu.matmul %18, %19, %cst_15 {dimension_numbers = #tpu.dot_dimension_numbers<[1], [0], [0], [1], [0, 0, 1, 1], [], []>} : vector<128x128xbf16>, vector<128x128xbf16>, vector<128x128xf32> -> vector<128x128xf32>
      %c0_16 = arith.constant 0 : index
      %c0_17 = arith.constant 0 : index
      %21 = vector.load %arg6[%c0_16, %c0_17] : memref<1x128xf32, #tpu.memory_space<vmem>>, vector<1x128xf32>
      %22 = vector.broadcast %21 : vector<1x128xf32> to vector<128x128xf32>
      %23 = arith.addf %20, %22 : vector<128x128xf32>
      %c0_18 = arith.constant 0 : index
      %c0_19 = arith.constant 0 : index
      %c0_20 = arith.constant 0 : index
      %24 = vector.load %arg7[%c0_18, %c0_19, %c0_20] : memref<1x128x128xf32, #tpu.memory_space<vmem>>, vector<1x128x128xf32>
      %25 = vector.shape_cast %24 : vector<1x128x128xf32> to vector<128x128xf32>
      %26 = vector.shape_cast %23 : vector<128x128xf32> to vector<1x128x128xf32>
      tpu.vector_store %arg7[%c0_18, %c0_19, %c0_20], %26 {strides = array<i32>} : memref<1x128x128xf32, #tpu.memory_space<vmem>>, vector<1x128x128xf32>,
    } else {
    }
    return
  }
  func.func @transform_0(%arg0: i32, %arg1: i32, %arg2: i32) -> (i32, i32, i32) {
    %c0_i32 = arith.constant 0 : i32
    return %arg0, %arg1, %arg2 : i32, i32, i32
  }
  func.func @transform_1(%arg0: i32, %arg1: i32, %arg2: i32) -> (i32, i32, i32) {
    %c0_i32 = arith.constant 0 : i32
    %c0_i32_0 = arith.constant 0 : i32
    %c0_i32_1 = arith.constant 0 : i32
    return %arg0, %c0_i32, %c0_i32_0 : i32, i32, i32
  }
  func.func @transform_2(%arg0: i32, %arg1: i32, %arg2: i32) -> (i32, i32) {
    %c0_i32 = arith.constant 0 : i32
    %c0_i32_0 = arith.constant 0 : i32
    %c0_i32_1 = arith.constant 0 : i32
    return %c0_i32, %c0_i32_0 : i32, i32
  }
  func.func @transform_3(%arg0: i32, %arg1: i32, %arg2: i32) -> (i32, i32) {
    %c0_i32 = arith.constant 0 : i32
    %c0_i32_0 = arith.constant 0 : i32
    %c0_i32_1 = arith.constant 0 : i32
    return %c0_i32, %c0_i32_0 : i32, i32
  }
  func.func @transform_4(%arg0: i32, %arg1: i32, %arg2: i32) -> (i32, i32, i32) {
    %c0_i32 = arith.constant 0 : i32
    %c0_i32_0 = arith.constant 0 : i32
    return %arg0, %arg1, %c0_i32 : i32, i32, i32
  }
}

</mosaic_0001>

<bundles_post_ra>
// kernel: tpu_custom_call.1
= control target key start
LH: loop header
LB: loop body
LE: loop exit
PB: predicated region body
PF: predicated region fallthrough
CT: control target
= control target key end

     0   :  { %s1724_s0 = inlined_call_operand.hbm [shape: bf16[2,128,128], index: 0, kind: input, shape index: {}]   ;;  %s1725_s1 = inlined_call_operand.hbm [shape: bf16[2,128,128], index: 1, kind: input, shape index: {}]   ;;  %s1726_s2 = inlined_call_operand.hbm [shape: bf16[128,128], index: 2, kind: input, shape index: {}]   ;;  %s1727_s3 = inlined_call_operand.vmem [shape: f32[1,128], index: 3, kind: input, shape index: {}]   ;;  %s1728_s4 = inlined_call_operand.hbm [shape: f32[2,128,128], index: 4, kind: output, shape index: {}]  }
   0x1   :  { %1737 = sst [smem:[#allocation15_spill]] %s1724_s0 }
   0x2   :  { %1738 = sst [smem:[#allocation16_spill]] %s1726_s2 }
   0x3   :  { %9 = vsyncpa [#allocation4], 0 }
   0x4   :  { %11 = vsyncpa [#allocation4 + $0x1], 0 }
   0x5   :  { %12 = vsyncpa [#allocation7], 0 }
   0x6   :  { %14 = vsyncpa [#allocation7 + $0x1], 0 }
   0x7   :  { %15 = vsyncpa [#allocation5], 0 }
   0x8   :  { %17 = vsyncpa [#allocation5 + $0x1], 0  ;;  %s1415_s15 = smov 0   ;;  %s1417_s16 = smov 0  }
   0x9   :  { %s1419_s17 = smov 0   ;;  %s1421_s18 = smov 0  }
   0xa   :  { %s1423_s19 = smov 0   ;;  %s1425_s20 = smov 0  }
   0xb LB: > { %s1446_s21 = sadd.s32 4294967295, %s1380_s20   ;;  %s952_s22 = sadd.s32 4294967294, %s1380_s20   ;;  %s1380_s20 = sphi %s1425_s20, %s23_s20   ;;  %s1376_s19 = sphi %s1423_s19, %s1763_s19   ;;  %s1372_s18 = sphi %s1421_s18, %s1762_s18   ;;  %s1368_s17 = sphi %s1419_s17, %s1761_s17   ;;  %s1364_s16 = sphi %s1417_s16, %s1760_s16   ;;  %s1360_s15 = sphi %s1415_s15, %s1759_s15  }
   0xc   : > { %p66_p0 = scmp.ne.s32.totalorder %s1364_s16, %s1360_s15  ;;  %p1729_p1 = scmp.eq.s32.totalorder %s1446_s21, 0 }
   0xd   : > { %p166_p3 = scmp.eq.s32.totalorder %s952_s22, 1  ;;  %p953_p5 = scmp.ge.s32.totalorder %s1380_s20, 1 }
   0xe   : > { %p1455_p4 = por %p1729_p1, %p66_p0  ;;  %p173_p7 = scmp.lt.s32.totalorder %s1380_s20, 3 }
   0xf   : > { %p1460_p6 = por %p166_p3, %p66_p0  ;;  %s1382_s26 = smov [#allocation8]  }
  0x10   : > { %s1739_s23 = scalar_select %p1455_p4, 1, 0 }
  0x11   : > { %s1740_s24 = scalar_select %p1460_p6, 1, 0 }
  0x12   : > { %p1465_p8 = pnand %p953_p5, %p173_p7  ;;  %s185_s27 = sshll.u32 %s1382_s26, 4  ;;  %s186_s27 = int_to_ptr.vmem [resolvable:$true] %s185_s27 }
  0x13   : > { %s42_s29 = sadd.s32 1, %s1376_s19  ;;  %s1743_s2 = sld [smem:[#allocation16_spill]] }
  0x14   : > { %s1741_s25 = scalar_select %p1465_p8, 1, 0 }
  0x15   : > { %p1106_p9 = pneg %p1465_p8 }
  0x17   : > { %p1474_p11 = pnand %p1106_p9, %p1729_p1 }
  0x19   : > { %s1202_s6 = scalar_lea.hbm %s1743_s2, 1024  ;;  %p1204_p13 = pneg %p1474_p11 }
  0x1a   : > { %p1203_p12 = scmp.ne.s32.totalorder %s1743_s2, %s1202_s6  ;;  %p1209_p5 = scmp.lt.u32.totalorder %s1202_s6, %s1743_s2 }
  0x1c   : > { %p1205_p0 = pnand %p1204_p13, %p1203_p12 }
  0x1e   : > { %p1206_p3 = pneg %p1205_p0 }
  0x20   : > { %p1211_p7 = pnand %p1209_p5, %p1206_p3 }
  0x22   : > { %1214 = shalt.err (!%p1211_p7)
}
  0x23   : > { %s1215_s11 = scalar_lea.vmem %s186_s27, 1024  ;;  %p1223_p2 = scmp.lt.s32.totalorder %s186_s27, %s186_s27 }
  0x24   : > { %p1216_p9 = scmp.ne.s32.totalorder %s186_s27, %s1215_s11  ;;  %p1224_p6 = scmp.lt.s32.totalorder %s1215_s11, %s1215_s11 }
  0x26   : > { %p1218_p10 = pnand %p1216_p9, %p1204_p13  ;;  %p1225_p4 = por %p1224_p6, %p1223_p2 }
  0x28   : > { %p1219_p1 = pneg %p1218_p10 }
  0x2a   : > { %p1226_p8 = pnand %p1225_p4, %p1219_p1 }
  0x2c   : > { %1229 = shalt.err (!%p1226_p8)
}
  0x2d   : > { %s1732_s12 = smov 64   ;;  %s1734_s13 = smov 4  }
  0x2e   : > { %1109 = dma.hbm_to_vmem [thread:$0]  (!%p1474_p11), %s1743_s2, 1024, %s186_s27, [#allocation7], %s1732_s12, %s1732_s12, %s1734_s13  }
  0x2f   : > { %p44_p1 = scmp.ge.s32.totalorder %s42_s29, 2  ;;  %s53_s26 = sadd.s32 1, %s1368_s17 }
  0x30   : > { %p60_p2 = scmp.ne.s32.totalorder %s1368_s17, %s1364_s16  ;;  %p61_p4 = scmp.eq.s32.totalorder %s1380_s20, 0 }
  0x31   : > { %s1765_s29 = smov (%p44_p1, %s42_s29), 0  ;;  %p1746_p8 = scmp.eq.s32.totalorder %s1446_s21, 1 }
  0x32   : > { %1744 = sst [smem:[#allocation14_spill]] %s1765_s29  ;;  %p1504_p6 = por %p61_p4, %p60_p2 }
  0x33   : > { %p1510_p10 = por %p1746_p8, %p60_p2  ;;  %s46_s5 = ssub.s32 %s1376_s19, %s1765_s29 }
  0x34   : > { %p1122_p12 = scmp.lt.s32.totalorder %s1380_s20, 2  ;;  %p51_p11 = scmp.eq.s32.totalorder %s46_s5, 0 }
  0x35   : > { %s202_s27 = sand.u32 1, %s1368_s17   ;;  %s997_s8 = sshll.u32 %s1376_s19, 10 }
  0x36   : > { %s956_s6 = sshll.u32 %s202_s27, 6  ;;  %s1748_s0 = sld [smem:[#allocation15_spill]] }
  0x37   : > { %s1519_s7 = scalar_select %p51_p11, %s1368_s17, %s53_s26  }
  0x38   : > { %s206_s14 = scalar_lea.vmem [#allocation3], %s956_s6  ;;  %p1531_p13 = pnand %p1122_p12, %p1504_p6 }
  0x39   : > { %s216_s22 = sshll.u32 %s206_s14, 4  ;;  %s1538_s9 = scalar_lea.hbm %s1725_s1, %s997_s8  ;;  %s1527_s22 = int_to_ptr.vmem [resolvable:$true] %s216_s22 }
  0x3a   : > { %s230_s10 = scalar_lea.vmem [#allocation6], %s956_s6  ;;  %s1542_s2 = scalar_lea.sflag [#allocation4], %s202_s27 }
  0x3b   : > { %s1540_s13 = sshll.u32 %s230_s10, 4  ;;  %p1232_p3 = pneg %p1531_p13  ;;  %s1574_s13 = int_to_ptr.vmem [resolvable:$true] %s1540_s13 }
  0x3c   : > { %s1525_s11 = scalar_lea.hbm %s1748_s0, %s997_s8  ;;  %s1235_s12 = scalar_lea.hbm %s1748_s0, 2048 }
  0x3d   : > { %s1230_s14 = scalar_lea.hbm %s1525_s11, 1024  ;;  %p1236_p9 = scmp.lt.u32.totalorder %s1525_s11, %s1748_s0 }
  0x3e   : > { %p1231_p0 = scmp.ne.s32.totalorder %s1525_s11, %s1230_s14  ;;  %p1237_p1 = scmp.lt.u32.totalorder %s1235_s12, %s1230_s14 }
  0x3f   : > { %p1239_p4 = scmp.lt.u32.totalorder %s1230_s14, %s1525_s11 }
  0x40   : > { %p1233_p5 = pnand %p1232_p3, %p1231_p0  ;;  %p1238_p2 = por %p1237_p1, %p1236_p9 }
  0x42   : > { %p1234_p7 = pneg %p1233_p5  ;;  %p1240_p6 = por %p1239_p4, %p1238_p2 }
  0x44   : > { %p1241_p8 = pnand %p1240_p6, %p1234_p7 }
  0x46   : > { %1244 = shalt.err (!%p1241_p8)
}
  0x47   : > { %s1245_s27 = scalar_lea.vmem %s1527_s22, 1024  ;;  %s1385_s29 = smov [#allocation3]  }
  0x48   : > { %p1246_p12 = scmp.ne.s32.totalorder %s1527_s22, %s1245_s27  ;;  %s1250_s6 = sshll.u32 %s1385_s29, 4  ;;  %s1251_s6 = int_to_ptr.vmem [resolvable:$false] %s1250_s6 }
  0x49   : > { %s1252_s10 = scalar_lea.vmem %s1251_s6, 2048  ;;  %p1253_p5 = scmp.lt.s32.totalorder %s1527_s22, %s1251_s6 }
  0x4a   : > { %p1248_p11 = pnand %p1246_p12, %p1232_p3  ;;  %p1254_p9 = scmp.lt.s32.totalorder %s1252_s10, %s1245_s27 }
  0x4c   : > { %p1249_p0 = pneg %p1248_p11  ;;  %p1255_p1 = por %p1254_p9, %p1253_p5 }
  0x4e   : > { %p1256_p2 = pnand %p1255_p1, %p1249_p0 }
  0x50   : > { %1259 = shalt.err (!%p1256_p2)
}
  0x51   : > { %s1750_s14 = smov 4   ;;  %s1751_s30 = smov 64  }
  0x52   : > { %1113 = dma.hbm_to_vmem [thread:$0]  (!%p1531_p13), %s1525_s11, 1024, %s1527_s22, %s1542_s2, %s1751_s30, %s1751_s30, %s1750_s14  }
  0x53   : > { %s226_s12 = sand.u32 1, %s1380_s20   ;;  %s1260_s8 = scalar_lea.hbm %s1538_s9, 1024 }
  0x54   : > { %s1577_s26 = scalar_lea.sflag [#allocation7], %s226_s12  ;;  %p1261_p7 = scmp.ne.s32.totalorder %s1538_s9, %s1260_s8 }
  0x55   : > { %s1265_s6 = scalar_lea.hbm %s1725_s1, 2048  ;;  %p1266_p8 = scmp.lt.u32.totalorder %s1538_s9, %s1725_s1 }
  0x56   : > { %p1263_p4 = pnand %p1261_p7, %p1232_p3  ;;  %p1267_p12 = scmp.lt.u32.totalorder %s1265_s6, %s1260_s8 }
  0x57   : > { %p1269_p0 = scmp.lt.u32.totalorder %s1260_s8, %s1538_s9 }
  0x58   : > { %p1264_p6 = pneg %p1263_p4  ;;  %p1268_p11 = por %p1267_p12, %p1266_p8 }
  0x5a   : > { %p1270_p5 = por %p1269_p0, %p1268_p11 }
  0x5c   : > { %p1271_p9 = pnand %p1270_p5, %p1264_p6 }
  0x5e   : > { %1274 = shalt.err (!%p1271_p9)
}
  0x5f   : > { %s1275_s2 = scalar_lea.vmem %s1574_s13, 1024  ;;  %s1386_s11 = smov [#allocation6]  }
  0x60   : > { %p1276_p1 = scmp.ne.s32.totalorder %s1574_s13, %s1275_s2  ;;  %s1280_s22 = sshll.u32 %s1386_s11, 4  ;;  %s1281_s22 = int_to_ptr.vmem [resolvable:$false] %s1280_s22 }
  0x61   : > { %s1282_s0 = scalar_lea.vmem %s1281_s22, 2048  ;;  %p1283_p4 = scmp.lt.s32.totalorder %s1574_s13, %s1281_s22 }
  0x62   : > { %p1278_p2 = pnand %p1276_p1, %p1232_p3  ;;  %p1284_p8 = scmp.lt.s32.totalorder %s1282_s0, %s1275_s2 }
  0x64   : > { %p1279_p7 = pneg %p1278_p2  ;;  %p1285_p12 = por %p1284_p8, %p1283_p4 }
  0x66   : > { %p1286_p11 = pnand %p1285_p12, %p1279_p7 }
  0x68   : > { %1289 = shalt.err (!%p1286_p11)
}
  0x69   : > { %1116 = dma.hbm_to_vmem [thread:$0]  (!%p1531_p13), %s1538_s9, 1024, %s1574_s13, %s1577_s26, %s1751_s30, %s1751_s30, %s1750_s14  }
  0x6a   : > { %p1752_p3 = scmp.ne.s32.totalorder %s1741_s25, 0 }
  0x6b   : > { %s1609_s12 = sand.u32 (!%p1752_p3), 1, %s1364_s16   ;;  %p1753_p6 = scmp.ne.s32.totalorder (!%p1752_p3), %s1739_s23, 0 }
  0x6c   : > { %249 = sbr.rel (%p1752_p3) target bundleno = 629 (0x275), region = 36  ;;  %s963_s8 = sshll.u32 (!%p1752_p3), %s1609_s12, 6 }
  0x6d   : > { %s252_s27 = scalar_lea.sflag (!%p1752_p3), [#allocation4], %s1609_s12  ;;  %s1613_s29 = scalar_lea.vmem (!%p1752_p3), [#allocation3], %s963_s8 }
  0x73   : > { %1343 = dma.done.wait (%p1753_p6), %s252_s27, 1024  }
  0x74   : > { %1345 = vsyncadd (%p1753_p6), %s252_s27, 4294966272  ;;  %s260_s13 = sand.u32 1, %s1446_s21   ;;  %s1620_s5 = scalar_lea.vmem [#allocation6], %s963_s8 }
  0x75   : > { %s261_s25 = scalar_lea.sflag [#allocation7], %s260_s13 }
  0x76   : > { %1347 = dma.done.wait (%p1753_p6), %s261_s25, 1024  }
  0x77   : > { %1349 = vsyncadd (%p1753_p6), %s261_s25, 4294966272  ;;  %p1754_p13 = scmp.eq.s32.totalorder %s1446_s21, 0 }
  0x79   : > { %1351 = dma.done.wait (%p1754_p13), [#allocation7], 1024   ;;  %p1755_p0 = pmov %p1754_p13 }
  0x7a   : > { %v1178_v0 = vld [vmem:[%s1620_s5] sm:$0xff]   ;;  %v1179_v1 = vld [vmem:[%s1620_s5 + $0x8] sm:$0xff]   ;;  %v1180_v2 = vld [vmem:[%s1620_s5 + $0x10] sm:$0xff]   ;;  %s966_s21 = sshll.u32 %s1609_s12, 7  ;;  %s999_s30 = sshll.u32 %s1372_s18, 11 }
  0x7b   : > { %1353 = vsyncadd (%p1755_p0), [#allocation7], 4294966272  ;;  %1032 = vmatprep.subr.bf16.mxu0 %v1178_v0  ;;  %v1181_v3 = vld [vmem:[%s1620_s5 + $0x18] sm:$0xff]   ;;  %v1186_v4 = vld [vmem:[%s1613_s29] sm:$0xff]   ;;  %s1650_s14 = scalar_lea.vmem [#allocation9], %s966_s21  ;;  %s1670_s2 = scalar_lea.hbm %s1728_s4, %s999_s30 }
  0x7c   : > { %1033 = vmatpush3.bf16.msra.mxu0 %v1178_v0  ;;  %1048 = vmatprep.mubr.bf16.mxu0 %v1186_v4  ;;  %v1182_v5 = vld [vmem:[%s1620_s5 + $0x20] sm:$0xff]   ;;  %v1183_v6 = vld [vmem:[%s1620_s5 + $0x28] sm:$0xff]   ;;  %v1184_v9 = vld [vmem:[%s1620_s5 + $0x30] sm:$0xff]   ;;  %s826_s26 = sshll.u32 %s1650_s14, 4  ;;  %s811_s18 = scalar_lea.sflag [#allocation5], %s1609_s12  ;;  %s1672_s26 = int_to_ptr.vmem [resolvable:$true] %s826_s26 }
  0x7d   : > { %1034 = vmatprep.subr.bf16.mxu0 %v1179_v1  ;;  %v1194_v7 = vld [vmem:[#allocation8] sm:$0xff]   ;;  %v1195_v8 = vld [vmem:[#allocation8 + $0x8] sm:$0xff]   ;;  %v1196_v10 = vld [vmem:[#allocation8 + $0x10] sm:$0xff]   ;;  %s1290_s11 = scalar_lea.vmem %s1672_s26, 2048  ;;  %s1387_s22 = smov [#allocation9]  }
  0x7e   : > { %1064 = vmatprep.subr.bf16.mxu1 %v1194_v7  ;;  %v1185_v11 = vld [vmem:[%s1620_s5 + $0x38] sm:$0xff]   ;;  %v1198_v13 = vld [vmem:[#allocation8 + $0x20] sm:$0xff]   ;;  %v1187_v14 = vld [vmem:[%s1613_s29 + $0x8] sm:$0xff]   ;;  %p1291_p5 = scmp.ne.s32.totalorder %s1672_s26, %s1290_s11  ;;  %s1294_s0 = sshll.u32 %s1387_s22, 4  ;;  %s1295_s0 = int_to_ptr.vmem [resolvable:$false] %s1294_s0 }
  0x7f   : > { %1065 = vmatpush3.bf16.msra.mxu1 %v1194_v7  ;;  %v1197_v12 = vld [vmem:[#allocation8 + $0x18] sm:$0xff]   ;;  %v1188_v15 = vld [vmem:[%s1613_s29 + $0x10] sm:$0xff]   ;;  %v1199_v16 = vld [vmem:[#allocation8 + $0x28] sm:$0xff]   ;;  %s1296_s8 = scalar_lea.vmem %s1295_s0, 4096  ;;  %p1297_p2 = scmp.lt.s32.totalorder %s1672_s26, %s1295_s0 }
  0x80   : > { %1035 = vmatpush3.bf16.msra.mxu0 %v1179_v1  ;;  %1066 = vmatprep.subr.bf16.mxu1 %v1195_v8  ;;  %v1200_v17 = vld [vmem:[#allocation8 + $0x30] sm:$0xff]   ;;  %v1189_v18 = vld [vmem:[%s1613_s29 + $0x18] sm:$0xff]   ;;  %v1190_v19 = vld [vmem:[%s1613_s29 + $0x20] sm:$0xff]   ;;  %p1292_p9 = pnand %p1291_p5, %p1510_p10  ;;  %p1298_p7 = scmp.lt.s32.totalorder %s1296_s8, %s1290_s11 }
  0x81   : > { %1036 = vmatprep.subr.bf16.mxu0 %v1180_v2  ;;  %v1191_v20 = vld [vmem:[%s1613_s29 + $0x28] sm:$0xff]   ;;  %v1192_v21 = vld [vmem:[%s1613_s29 + $0x30] sm:$0xff]   ;;  %v1193_v22 = vld [vmem:[%s1613_s29 + $0x38] sm:$0xff]  }
  0x82   : > { %v1201_v23 = vld [vmem:[#allocation8 + $0x38] sm:$0xff]   ;;  %v983_v48 = vld [vmem:[%s1727_s3] ss:$0 sm:$0xff]  ;;  %p1293_p1 = pneg %p1292_p9  ;;  %p1299_p4 = por %p1298_p7, %p1297_p2 }
  0x83   : > { %1067 = vmatpush3.bf16.msra.mxu1 %v1195_v8 }
  0x84   : > { %1037 = vmatpush3.bf16.msra.mxu0 %v1180_v2  ;;  %1068 = vmatprep.subr.bf16.mxu1 %v1196_v10  ;;  %p1300_p8 = pnand %p1299_p4, %p1293_p1 }
  0x85   : > { %1038 = vmatprep.subr.bf16.mxu0 %v1181_v3 }
  0x87   : > { %1069 = vmatpush3.bf16.msra.mxu1 %v1196_v10 }
  0x88   : > { %1039 = vmatpush3.bf16.msra.mxu0 %v1181_v3  ;;  %1070 = vmatprep.subr.bf16.mxu1 %v1197_v12 }
  0x89   : > { %1040 = vmatprep.subr.bf16.mxu0 %v1182_v5 }
  0x8b   : > { %1071 = vmatpush3.bf16.msra.mxu1 %v1197_v12 }
  0x8c   : > { %1041 = vmatpush3.bf16.msra.mxu0 %v1182_v5  ;;  %1072 = vmatprep.subr.bf16.mxu1 %v1198_v13 }
  0x8d   : > { %1042 = vmatprep.subr.bf16.mxu0 %v1183_v6 }
  0x8f   : > { %1073 = vmatpush3.bf16.msra.mxu1 %v1198_v13 }
  0x90   : > { %1043 = vmatpush3.bf16.msra.mxu0 %v1183_v6  ;;  %1074 = vmatprep.subr.bf16.mxu1 %v1199_v16 }
  0x91   : > { %1044 = vmatprep.subr.bf16.mxu0 %v1184_v9 }
  0x93   : > { %1075 = vmatpush3.bf16.msra.mxu1 %v1199_v16 }
  0x94   : > { %1045 = vmatpush3.bf16.msra.mxu0 %v1184_v9  ;;  %1076 = vmatprep.subr.bf16.mxu1 %v1200_v17 }
  0x95   : > { %1046 = vmatprep.subr.bf16.mxu0 %v1185_v11 }
  0x97   : > { %1077 = vmatpush3.bf16.msra.mxu1 %v1200_v17 }
  0x98   : > { %1047 = vmatpush3.bf16.msra.mxu0 %v1185_v11  ;;  %1078 = vmatprep.subr.bf16.mxu1 %v1201_v23 }
  0x9b   : > { %1049 = vmatmul.mubr.bf16.vlgmr.msra.gmra.mrb[0].mxu0 %v1187_v14  ;;  %1079 = vmatpush3.bf16.msra.mxu1 %v1201_v23 }
  0x9c   : > { %1052 = vmatprep.mubr.bf16.mxu0 %v1188_v15 }
  0xa3   : > { %1053 = vmatmul.mubr.bf16.gmra.mrb[4].mxu0 %v1189_v18 }
  0xa4   : > { %1056 = vmatprep.mubr.bf16.mxu0 %v1190_v19 }
  0xab   : > { %1057 = vmatmul.mubr.bf16.gmra.mrb[8].mxu0 %v1191_v20 }
  0xac   : > { %1060 = vmatprep.mubr.bf16.mxu0 %v1192_v21 }
  0xb3   : > { %1061 = vmatmul.mubr.bf16.gmra.mrb[12].mxu0 %v1193_v22 }
 0x16e   : > { %v1050_v24 = vpop.f32.mrb[0].mxu0 }
 0x16f   : > { %v504_v25 = vpop.f32.mrb[1].mxu0 }
 0x170   : > { %v1051_v26 = vpop.f32.mrb[2].mxu0 }
 0x171   : > { %v619_v27 = vpack.c.bf16 %v1051_v26, %v1050_v24  ;;  %v507_v28 = vpop.f32.mrb[3].mxu0 }
 0x172   : > { %v618_v29 = vpack.c.bf16 %v507_v28, %v504_v25 }
 0x174   : > { %1080 = vmatprep.mubr.bf16.mxu1 %v618_v29 }
 0x175   : > { %1081 = vmatmul.mubr.bf16.vlgmr.msra.gmra.mrb[0].mxu1 %v619_v27 }
 0x176   : > { %v1054_v30 = vpop.f32.mrb[4].mxu0 }
 0x177   : > { %v520_v31 = vpop.f32.mrb[5].mxu0 }
 0x178   : > { %v1055_v32 = vpop.f32.mrb[6].mxu0 }
 0x179   : > { %v621_v33 = vpack.c.bf16 %v1055_v32, %v1054_v30  ;;  %v523_v34 = vpop.f32.mrb[7].mxu0 }
 0x17a   : > { %v620_v35 = vpack.c.bf16 %v523_v34, %v520_v31 }
 0x17c   : > { %1084 = vmatprep.mubr.bf16.mxu1 %v620_v35 }
 0x17d   : > { %1085 = vmatmul.mubr.bf16.gmra.mrb[4].mxu1 %v621_v33 }
 0x17e   : > { %v1058_v36 = vpop.f32.mrb[8].mxu0 }
 0x17f   : > { %v536_v37 = vpop.f32.mrb[9].mxu0 }
 0x180   : > { %v1059_v38 = vpop.f32.mrb[10].mxu0 }
 0x181   : > { %v623_v39 = vpack.c.bf16 %v1059_v38, %v1058_v36  ;;  %v539_v40 = vpop.f32.mrb[11].mxu0 }
 0x182   : > { %v622_v41 = vpack.c.bf16 %v539_v40, %v536_v37 }
 0x184   : > { %1088 = vmatprep.mubr.bf16.mxu1 %v622_v41 }
 0x185   : > { %1089 = vmatmul.mubr.bf16.gmra.mrb[8].mxu1 %v623_v39 }
 0x186   : > { %v1062_v42 = vpop.f32.mrb[12].mxu0 }
 0x187   : > { %v552_v43 = vpop.f32.mrb[13].mxu0 }
 0x188   : > { %v1063_v44 = vpop.f32.mrb[14].mxu0 }
 0x189   : > { %v625_v45 = vpack.c.bf16 %v1063_v44, %v1062_v42  ;;  %v555_v46 = vpop.f32.mrb[15].mxu0 }
 0x18a   : > { %v624_v47 = vpack.c.bf16 %v555_v46, %v552_v43 }
 0x18c   : > { %1092 = vmatprep.mubr.bf16.mxu1 %v624_v47 }
 0x18d   : > { %1093 = vmatmul.mubr.bf16.gmra.mrb[12].mxu1 %v625_v45 }
 0x248   : > { %v1082_v49 = vpop.f32.mrb[0].mxu1 }
 0x249   : > { %v740_v50 = vadd.f32 %v1082_v49, %v983_v48  ;;  %v731_v51 = vpop.f32.mrb[1].mxu1 }
 0x24a   : > { %v732_v52 = vadd.f32 %v983_v48, %v731_v51  ;;  %v1083_v53 = vpop.f32.mrb[2].mxu1 }
 0x24b   : > { %796 = vst [vmem:[%s1650_s14 + $0x10] sm:$0xff] %v740_v50  ;;  %v743_v54 = vadd.f32 %v1083_v53, %v983_v48  ;;  %v734_v55 = vpop.f32.mrb[3].mxu1 }
 0x24c   : > { %794 = vst [vmem:[%s1650_s14] sm:$0xff] %v732_v52  ;;  %v735_v56 = vadd.f32 %v983_v48, %v734_v55 }
 0x24d   : > { %797 = vst [vmem:[%s1650_s14 + $0x18] sm:$0xff] %v743_v54 }
 0x24e   : > { %795 = vst [vmem:[%s1650_s14 + $0x8] sm:$0xff] %v735_v56 }
 0x250   : > { %v1086_v57 = vpop.f32.mrb[4].mxu1 }
 0x251   : > { %v756_v58 = vadd.f32 %v1086_v57, %v983_v48  ;;  %v747_v59 = vpop.f32.mrb[5].mxu1 }
 0x252   : > { %v748_v60 = vadd.f32 %v983_v48, %v747_v59  ;;  %v1087_v61 = vpop.f32.mrb[6].mxu1 }
 0x253   : > { %800 = vst [vmem:[%s1650_s14 + $0x30] sm:$0xff] %v756_v58  ;;  %v759_v62 = vadd.f32 %v1087_v61, %v983_v48  ;;  %v750_v63 = vpop.f32.mrb[7].mxu1 }
 0x254   : > { %798 = vst [vmem:[%s1650_s14 + $0x20] sm:$0xff] %v748_v60  ;;  %v751_v0 = vadd.f32 %v983_v48, %v750_v63 }
 0x255   : > { %801 = vst [vmem:[%s1650_s14 + $0x38] sm:$0xff] %v759_v62 }
 0x256   : > { %799 = vst [vmem:[%s1650_s14 + $0x28] sm:$0xff] %v751_v0 }
 0x258   : > { %v1090_v1 = vpop.f32.mrb[8].mxu1 }
 0x259   : > { %v772_v2 = vadd.f32 %v1090_v1, %v983_v48  ;;  %v763_v3 = vpop.f32.mrb[9].mxu1 }
 0x25a   : > { %v764_v4 = vadd.f32 %v983_v48, %v763_v3  ;;  %v1091_v5 = vpop.f32.mrb[10].mxu1 }
 0x25b   : > { %804 = vst [vmem:[%s1650_s14 + $0x50] sm:$0xff] %v772_v2  ;;  %v775_v6 = vadd.f32 %v1091_v5, %v983_v48  ;;  %v766_v7 = vpop.f32.mrb[11].mxu1 }
 0x25c   : > { %802 = vst [vmem:[%s1650_s14 + $0x40] sm:$0xff] %v764_v4  ;;  %v767_v8 = vadd.f32 %v983_v48, %v766_v7 }
 0x25d   : > { %805 = vst [vmem:[%s1650_s14 + $0x58] sm:$0xff] %v775_v6 }
 0x25e   : > { %803 = vst [vmem:[%s1650_s14 + $0x48] sm:$0xff] %v767_v8 }
 0x260   : > { %v1094_v9 = vpop.f32.mrb[12].mxu1 }
 0x261   : > { %v788_v10 = vadd.f32 %v1094_v9, %v983_v48  ;;  %v779_v11 = vpop.f32.mrb[13].mxu1 }
 0x262   : > { %v780_v12 = vadd.f32 %v983_v48, %v779_v11  ;;  %v1095_v13 = vpop.f32.mrb[14].mxu1 }
 0x263   : > { %808 = vst [vmem:[%s1650_s14 + $0x70] sm:$0xff] %v788_v10  ;;  %v791_v14 = vadd.f32 %v1095_v13, %v983_v48  ;;  %v782_v15 = vpop.f32.mrb[15].mxu1 }
 0x264   : > { %806 = vst [vmem:[%s1650_s14 + $0x60] sm:$0xff] %v780_v12  ;;  %v783_v16 = vadd.f32 %v983_v48, %v782_v15 }
 0x265   : > { %809 = vst [vmem:[%s1650_s14 + $0x78] sm:$0xff] %v791_v14 }
 0x266   : > { %807 = vst [vmem:[%s1650_s14 + $0x68] sm:$0xff] %v783_v16 }
 0x267   : > { %1303 = shalt.err (!%p1300_p8)
}
 0x268   : > { %s1304_s27 = scalar_lea.hbm %s1670_s2, 2048  ;;  %s1308_s25 = scalar_lea.hbm %s1728_s4, 4096 }
 0x269   : > { %p1305_p12 = scmp.ne.s32.totalorder %s1670_s2, %s1304_s27  ;;  %p1309_p6 = scmp.lt.u32.totalorder %s1670_s2, %s1728_s4 }
 0x26a   : > { %p1310_p13 = scmp.lt.u32.totalorder %s1308_s25, %s1304_s27  ;;  %p1312_p5 = scmp.lt.u32.totalorder %s1304_s27, %s1670_s2 }
 0x26b   : > { %p1306_p11 = pnand %p1305_p12, %p1510_p10 }
 0x26c   : > { %p1311_p0 = por %p1310_p13, %p1309_p6 }
 0x26d   : > { %p1307_p3 = pneg %p1306_p11 }
 0x26e   : > { %p1313_p9 = por %p1312_p5, %p1311_p0 }
 0x270   : > { %p1314_p1 = pnand %p1313_p9, %p1307_p3 }
 0x272   : > { %1317 = shalt.err (!%p1314_p1)
}
 0x273   : > { %s1388_s23 = smov 128   ;;  %s1389_s9 = smov 8  }
 0x274   : > { %1104 = dma.vmem_to_hbm [thread:$0]  (%p1510_p10), %s1672_s26, 2048, %s1670_s2, %s811_s18, %s1388_s23, %s1388_s23, %s1389_s9  }
 0x275 PF: > { %s841_s14 = sand.u32 1, %s1360_s15   ;;  %p1756_p2 = scmp.ne.s32.totalorder %s1740_s24, 0 }
 0x276   : > { %p1757_p7 = scmp.ge.s32.totalorder %s1380_s20, 2  ;;  %s842_s30 = scalar_lea.sflag [#allocation5], %s841_s14 }
 0x278   : > { %p1118_p4 = pnand %p1757_p7, %p1756_p2 }
 0x27a   : > { %1355 = dma.done.wait (!%p1118_p4), %s842_s30, 2048  }
 0x27b   : > { %1357 = vsyncadd (!%p1118_p4), %s842_s30, 4294965248  ;;  %s23_s20 = sadd.s32 1, %s1380_s20   ;;  %s1758_s28 = sld [smem:[#allocation14_spill]] }
 0x27c   : > { %p20_p8 = scmp.ge.s32.totalorder %s23_s20, 4   ;;  %s1759_s15 = smov %s1364_s16 }
 0x27d   : > { %s1760_s16 = smov %s1368_s17  ;;  %s1761_s17 = smov %s1519_s7 }
 0x27e   : > { %s1762_s18 = smov %s1376_s19  ;;  %22 = sbr.rel (!%p20_p8) target bundleno = 11 (0xb), region = 107 }
 0x281   : > { %s1763_s19 = smov %s1758_s28 }
 0x285   :  { %847 = vsyncpa [#allocation4], 1 }
 0x286   :  { %849 = vsyncpa [#allocation4 + $0x1], 1 }
 0x287   :  { %850 = vsyncpa [#allocation7], 1 }
 0x288   :  { %852 = vsyncpa [#allocation7 + $0x1], 1 }
 0x289   :  { %853 = vsyncpa [#allocation5], 1 }
 0x28a   :  { %855 = vsyncpa [#allocation5 + $0x1], 1 }

</bundles_post_ra>
